<compile_context>
chip_gen: v6e
topology: v6e:2x2x1
jax: 0.10.0
libtpu: 0.0.40
codegen_flags: <defaults>
</compile_context>

<pallas_src>
import functools

import jax
import jax.numpy as jnp
from jax.experimental import pallas as pl
from jax.experimental.pallas import tpu as pltpu


_LANE_W = 512          # slab lane width (multiple of 128) -> unmasked vector stores
_MAX_BLOCK_ROWS = 512  # rows per grid block (multiple of 16); ~1 MiB f32 per block


def _round_up(v, m):
    return ((v + m - 1) // m) * m


def _mix32(x, k):
    """lowbias32-style 32-bit integer mixer (pure VPU int ops)."""
    x = x ^ k
    x = x ^ (x >> jnp.uint32(16))
    x = x * jnp.uint32(0x7FEB352D)
    x = x ^ (x >> jnp.uint32(15))
    x = x * jnp.uint32(0x846CA68B)
    x = x ^ (x >> jnp.uint32(16))
    return x


def _bits_to_uniform_open(bits_u32):
    """uint32 random bits -> float32 uniform in (0, 1] (mantissa trick)."""
    m = (bits_u32 >> jnp.uint32(9)) | jnp.uint32(0x3F800000)
    f = jax.lax.bitcast_convert_type(m, jnp.float32)   # [1, 2)
    return 2.0 - f                                      # (0, 1] -> log() is finite


def _gaussian_noise_kernel(seed_ref, x_ref, o_ref, *, std, lane_w, block_rows):
    half = block_rows // 2
    pid = pl.program_id(0)
    seed = seed_ref[0].astype(jnp.uint32)

    # Unique pair index per (u1, u2) draw: each pair produces TWO normals,
    # one for the top half of the block and one for the bottom half.
    row = jax.lax.broadcasted_iota(jnp.int32, (half, lane_w), 0)
    col = jax.lax.broadcasted_iota(jnp.int32, (half, lane_w), 1)
    pair_id = (pid * (half * lane_w) + row * lane_w + col).astype(jnp.uint32)

    h = _mix32(pair_id, seed ^ jnp.uint32(0x9E3779B9))
    bits1 = _mix32(h, jnp.uint32(0x85EBCA6B))
    bits2 = _mix32(h ^ jnp.uint32(0xC2B2AE35), jnp.uint32(0x27D4EB2F))

    u1 = _bits_to_uniform_open(bits1)
    u2 = _bits_to_uniform_open(bits2)

    # Box-Muller, both branches; std folded into r (saves a VPU multiply).
    r = std * jnp.sqrt(-2.0 * jnp.log(u1))
    theta = (2.0 * jnp.pi) * u2
    z_top = r * jnp.cos(theta)
    z_bot = r * jnp.sin(theta)

    o_ref[:half, :] = (x_ref[:half, :].astype(jnp.float32) + z_top).astype(o_ref.dtype)
    o_ref[half:, :] = (x_ref[half:, :].astype(jnp.float32) + z_bot).astype(o_ref.dtype)


class GaussianNoise:
    """Pallas port of the PyTorch GaussianNoise module.

    Pass a fresh `seed` each forward to match PyTorch's per-call resampling.
    """

    def __init__(self, shape=(100, 1, 28, 28), std=0.05):
        # The torch "noise" buffer only caps the batch size; values are
        # re-sampled every forward, so no persistent parameter is needed.
        self.noise_shape = tuple(shape)
        self.std = float(std)

    def __call__(self, x, seed=0):
        n = x.shape[0]
        assert n <= self.noise_shape[0], "batch exceeds noise buffer"
        assert tuple(x.shape[1:]) == self.noise_shape[1:], "trailing dims mismatch"

        orig_shape = x.shape
        orig_dtype = x.dtype
        total = x.size

        # Lane-dense slab: flatten, pad to (padded_rows, 512).
        rows_needed = -(-total // _LANE_W)
        block_rows = min(_MAX_BLOCK_ROWS, _round_up(max(rows_needed, 16), 16))
        padded_rows = _round_up(rows_needed, block_rows)
        padded_total = padded_rows * _LANE_W

        flat = x.reshape(-1)
        if padded_total != total:
            flat = jnp.pad(flat, (0, padded_total - total))
        slab = flat.reshape(padded_rows, _LANE_W)

        num_blocks = padded_rows // block_rows
        seed_arr = jnp.asarray([seed], dtype=jnp.int32)

        kernel = functools.partial(
            _gaussian_noise_kernel,
            std=self.std, lane_w=_LANE_W, block_rows=block_rows)

        out = pl.pallas_call(
            kernel,
            out_shape=jax.ShapeDtypeStruct(slab.shape, slab.dtype),
            grid=(num_blocks,),
            in_specs=[
                pl.BlockSpec(memory_space=pltpu.MemorySpace.SMEM),      # seed scalar
                pl.BlockSpec((block_rows, _LANE_W), lambda i: (i, 0)),  # x slab tile
            ],
            out_specs=pl.BlockSpec((block_rows, _LANE_W), lambda i: (i, 0)),
            compiler_params=pltpu.CompilerParams(
                dimension_semantics=("parallel",)),
            cost_estimate=pl.CostEstimate(
                flops=30 * padded_total,             # hash + Box-Muller arithmetic
                transcendentals=2 * padded_total,    # (log+sqrt+sin+cos)/2 per elem
                bytes_accessed=2 * padded_total * 4),
        )(seed_arr, slab)

        return out.reshape(-1)[:total].reshape(orig_shape).astype(orig_dtype)


if __name__ == "__main__":
    key = jax.random.PRNGKey(0)
    # Small shapes: noise buffer (8, 4, 16, 16), input batch 2.
    N, C, H, W = 2, 4, 16, 16
    module = GaussianNoise(shape=(8, C, H, W), std=0.05)

    x = jax.random.normal(key, (N, C, H, W), dtype=jnp.float32)
    y = module(x, seed=0)
    y = jax.block_until_ready(y)

    assert y.shape == x.shape and y.dtype == x.dtype

    noise = y - x
    # ~N(0, 0.05): bounded perturbation, near-zero mean, std close to 0.05.
    assert float(jnp.max(jnp.abs(noise))) < 0.5
    assert abs(float(jnp.mean(noise))) < 0.01
    s = float(jnp.std(noise))
    assert 0.035 < s < 0.065, f"noise std off: {s}"

    # Fresh seed -> fresh noise (per-forward resampling semantics).
    y2 = jax.block_until_ready(module(x, seed=1))
    assert float(jnp.max(jnp.abs(y2 - y))) > 0.0

    print("KERNEL_OK")
</pallas_src>

<mosaic_0001>
module attributes {stable_mosaic.version = 11 : i64} {
  func.func @_gaussian_noise_kernel(%arg0: i32, %arg1: memref<1xi32, #tpu.memory_space<smem>>, %arg2: memref<16x512xf32, #tpu.memory_space<vmem>>, %arg3: memref<16x512xf32, #tpu.memory_space<vmem>>) attributes {dimension_semantics = [#tpu.dimension_semantics<parallel>], iteration_bounds = array<i64: 1>, scalar_prefetch = 0 : i64, scratch_operands = 0 : i64, tpu.core_type = #tpu.core_type<tc>, window_params = [{transform_indices = @transform_0, window_bounds = array<i64: 1>}, {transform_indices = @transform_1, window_bounds = array<i64: 16, 512>}, {transform_indices = @transform_2, window_bounds = array<i64: 16, 512>}]} {
    %c0 = arith.constant 0 : index
    %0 = memref.load %arg1[%c0] : memref<1xi32, #tpu.memory_space<smem>>
    %1 = tpu.iota {dimensions = array<i32: 0>} : vector<8x512xi32>
    %2 = tpu.iota {dimensions = array<i32: 1>} : vector<8x512xi32>
    %c4096_i32 = arith.constant 4096 : i32
    %3 = arith.muli %arg0, %c4096_i32 : i32
    %c512_i32 = arith.constant 512 : i32
    %4 = vector.broadcast %c512_i32 : i32 to vector<8x512xi32>
    %5 = arith.muli %1, %4 : vector<8x512xi32>
    %6 = vector.broadcast %3 : i32 to vector<8x512xi32>
    %7 = arith.addi %6, %5 : vector<8x512xi32>
    %8 = arith.addi %7, %2 : vector<8x512xi32>
    %c-1640531527_i32 = arith.constant -1640531527 : i32
    %9 = arith.xori %0, %c-1640531527_i32 : i32
    %10 = vector.broadcast %9 : i32 to vector<8x512xi32>
    %11 = arith.xori %8, %10 : vector<8x512xi32>
    %c16_i32 = arith.constant 16 : i32
    %12 = vector.broadcast %c16_i32 : i32 to vector<8x512xi32>
    %13 = arith.shrui %11, %12 : vector<8x512xi32>
    %14 = arith.xori %11, %13 : vector<8x512xi32>
    %c2146121005_i32 = arith.constant 2146121005 : i32
    %15 = vector.broadcast %c2146121005_i32 : i32 to vector<8x512xi32>
    %16 = arith.muli %14, %15 : vector<8x512xi32>
    %c15_i32 = arith.constant 15 : i32
    %17 = vector.broadcast %c15_i32 : i32 to vector<8x512xi32>
    %18 = arith.shrui %16, %17 : vector<8x512xi32>
    %19 = arith.xori %16, %18 : vector<8x512xi32>
    %c-2073254261_i32 = arith.constant -2073254261 : i32
    %20 = vector.broadcast %c-2073254261_i32 : i32 to vector<8x512xi32>
    %21 = arith.muli %19, %20 : vector<8x512xi32>
    %c16_i32_0 = arith.constant 16 : i32
    %22 = vector.broadcast %c16_i32_0 : i32 to vector<8x512xi32>
    %23 = arith.shrui %21, %22 : vector<8x512xi32>
    %24 = arith.xori %21, %23 : vector<8x512xi32>
    %c-2048144789_i32 = arith.constant -2048144789 : i32
    %25 = vector.broadcast %c-2048144789_i32 : i32 to vector<8x512xi32>
    %26 = arith.xori %24, %25 : vector<8x512xi32>
    %c16_i32_1 = arith.constant 16 : i32
    %27 = vector.broadcast %c16_i32_1 : i32 to vector<8x512xi32>
    %28 = arith.shrui %26, %27 : vector<8x512xi32>
    %29 = arith.xori %26, %28 : vector<8x512xi32>
    %c2146121005_i32_2 = arith.constant 2146121005 : i32
    %30 = vector.broadcast %c2146121005_i32_2 : i32 to vector<8x512xi32>
    %31 = arith.muli %29, %30 : vector<8x512xi32>
    %c15_i32_3 = arith.constant 15 : i32
    %32 = vector.broadcast %c15_i32_3 : i32 to vector<8x512xi32>
    %33 = arith.shrui %31, %32 : vector<8x512xi32>
    %34 = arith.xori %31, %33 : vector<8x512xi32>
    %c-2073254261_i32_4 = arith.constant -2073254261 : i32
    %35 = vector.broadcast %c-2073254261_i32_4 : i32 to vector<8x512xi32>
    %36 = arith.muli %34, %35 : vector<8x512xi32>
    %c16_i32_5 = arith.constant 16 : i32
    %37 = vector.broadcast %c16_i32_5 : i32 to vector<8x512xi32>
    %38 = arith.shrui %36, %37 : vector<8x512xi32>
    %39 = arith.xori %36, %38 : vector<8x512xi32>
    %c-1028477387_i32 = arith.constant -1028477387 : i32
    %40 = vector.broadcast %c-1028477387_i32 : i32 to vector<8x512xi32>
    %41 = arith.xori %24, %40 : vector<8x512xi32>
    %c668265263_i32 = arith.constant 668265263 : i32
    %42 = vector.broadcast %c668265263_i32 : i32 to vector<8x512xi32>
    %43 = arith.xori %41, %42 : vector<8x512xi32>
    %c16_i32_6 = arith.constant 16 : i32
    %44 = vector.broadcast %c16_i32_6 : i32 to vector<8x512xi32>
    %45 = arith.shrui %43, %44 : vector<8x512xi32>
    %46 = arith.xori %43, %45 : vector<8x512xi32>
    %c2146121005_i32_7 = arith.constant 2146121005 : i32
    %47 = vector.broadcast %c2146121005_i32_7 : i32 to vector<8x512xi32>
    %48 = arith.muli %46, %47 : vector<8x512xi32>
    %c15_i32_8 = arith.constant 15 : i32
    %49 = vector.broadcast %c15_i32_8 : i32 to vector<8x512xi32>
    %50 = arith.shrui %48, %49 : vector<8x512xi32>
    %51 = arith.xori %48, %50 : vector<8x512xi32>
    %c-2073254261_i32_9 = arith.constant -2073254261 : i32
    %52 = vector.broadcast %c-2073254261_i32_9 : i32 to vector<8x512xi32>
    %53 = arith.muli %51, %52 : vector<8x512xi32>
    %c16_i32_10 = arith.constant 16 : i32
    %54 = vector.broadcast %c16_i32_10 : i32 to vector<8x512xi32>
    %55 = arith.shrui %53, %54 : vector<8x512xi32>
    %56 = arith.xori %53, %55 : vector<8x512xi32>
    %c9_i32 = arith.constant 9 : i32
    %57 = vector.broadcast %c9_i32 : i32 to vector<8x512xi32>
    %58 = arith.shrui %39, %57 : vector<8x512xi32>
    %c1065353216_i32 = arith.constant 1065353216 : i32
    %59 = vector.broadcast %c1065353216_i32 : i32 to vector<8x512xi32>
    %60 = arith.ori %58, %59 : vector<8x512xi32>
    %61 = tpu.bitcast %60 : vector<8x512xi32> -> vector<8x512xf32>
    %cst = arith.constant 2.000000e+00 : f32
    %62 = vector.broadcast %cst : f32 to vector<8x512xf32>
    %63 = arith.subf %62, %61 : vector<8x512xf32>
    %c9_i32_11 = arith.constant 9 : i32
    %64 = vector.broadcast %c9_i32_11 : i32 to vector<8x512xi32>
    %65 = arith.shrui %56, %64 : vector<8x512xi32>
    %c1065353216_i32_12 = arith.constant 1065353216 : i32
    %66 = vector.broadcast %c1065353216_i32_12 : i32 to vector<8x512xi32>
    %67 = arith.ori %65, %66 : vector<8x512xi32>
    %68 = tpu.bitcast %67 : vector<8x512xi32> -> vector<8x512xf32>
    %cst_13 = arith.constant 2.000000e+00 : f32
    %69 = vector.broadcast %cst_13 : f32 to vector<8x512xf32>
    %70 = arith.subf %69, %68 : vector<8x512xf32>
    %71 = math.log %63 : vector<8x512xf32>
    %cst_14 = arith.constant -2.000000e+00 : f32
    %72 = vector.broadcast %cst_14 : f32 to vector<8x512xf32>
    %73 = arith.mulf %72, %71 : vector<8x512xf32>
    %74 = math.sqrt %73 : vector<8x512xf32>
    %cst_15 = arith.constant 5.000000e-02 : f32
    %75 = vector.broadcast %cst_15 : f32 to vector<8x512xf32>
    %76 = arith.mulf %75, %74 : vector<8x512xf32>
    %cst_16 = arith.constant 6.28318548 : f32
    %77 = vector.broadcast %cst_16 : f32 to vector<8x512xf32>
    %78 = arith.mulf %77, %70 : vector<8x512xf32>
    %79 = math.cos %78 : vector<8x512xf32>
    %80 = arith.mulf %76, %79 : vector<8x512xf32>
    %81 = math.sin %78 : vector<8x512xf32>
    %82 = arith.mulf %76, %81 : vector<8x512xf32>
    %c0_17 = arith.constant 0 : index
    %c0_18 = arith.constant 0 : index
    %83 = vector.load %arg2[%c0_17, %c0_18] : memref<16x512xf32, #tpu.memory_space<vmem>>, vector<8x512xf32>
    %84 = arith.addf %83, %80 : vector<8x512xf32>
    %c0_19 = arith.constant 0 : index
    %c0_20 = arith.constant 0 : index
    %85 = vector.load %arg3[%c0_19, %c0_20] : memref<16x512xf32, #tpu.memory_space<vmem>>, vector<8x512xf32>
    tpu.vector_store %arg3[%c0_19, %c0_20], %84 {strides = array<i32>} : memref<16x512xf32, #tpu.memory_space<vmem>>, vector<8x512xf32>,
    %c8 = arith.constant 8 : index
    %c0_21 = arith.constant 0 : index
    %86 = vector.load %arg2[%c8, %c0_21] : memref<16x512xf32, #tpu.memory_space<vmem>>, vector<8x512xf32>
    %87 = arith.addf %86, %82 : vector<8x512xf32>
    %c8_22 = arith.constant 8 : index
    %c0_23 = arith.constant 0 : index
    %88 = vector.load %arg3[%c8_22, %c0_23] : memref<16x512xf32, #tpu.memory_space<vmem>>, vector<8x512xf32>
    tpu.vector_store %arg3[%c8_22, %c0_23], %87 {strides = array<i32>} : memref<16x512xf32, #tpu.memory_space<vmem>>, vector<8x512xf32>,
    return
  }
  func.func @transform_0(%arg0: i32) -> i32 {
    %c0_i32 = arith.constant 0 : i32
    %c0_i32_0 = arith.constant 0 : i32
    return %c0_i32 : i32
  }
  func.func @transform_1(%arg0: i32) -> (i32, i32) {
    %c0_i32 = arith.constant 0 : i32
    %c0_i32_0 = arith.constant 0 : i32
    return %arg0, %c0_i32 : i32, i32
  }
  func.func @transform_2(%arg0: i32) -> (i32, i32) {
    %c0_i32 = arith.constant 0 : i32
    %c0_i32_0 = arith.constant 0 : i32
    return %arg0, %c0_i32 : i32, i32
  }
}

</mosaic_0001>

<bundles_post_ra>
// kernel: tpu_custom_call.1
= control target key start
LH: loop header
LB: loop body
LE: loop exit
PB: predicated region body
PF: predicated region fallthrough
CT: control target
= control target key end

     0   :  { %8 = vsyncpa [#allocation4], 0  ;;  %s1697_s0 = inlined_call_operand.<no memory space> [shape: s32[1], index: 0, kind: input, shape index: {}]   ;;  %s1698_s1 = inlined_call_operand.hbm [shape: f32[16,512], index: 1, kind: input, shape index: {}]   ;;  %s1699_s2 = inlined_call_operand.hbm [shape: f32[16,512], index: 2, kind: output, shape index: {}]  }
   0x1   :  { %9 = vsyncpa [#allocation5], 0  ;;  %s1248_s9 = smov [#allocation3]  }
   0x2   :  { %s17_s10 = sshll.u32 %s1248_s9, 4  ;;  %s18_s10 = int_to_ptr.vmem [resolvable:$true] %s17_s10 }
   0x3   :  { %s1212_s11 = scalar_lea.vmem %s18_s10, 1024  ;;  %p1217_p1 = scmp.lt.s32.totalorder %s18_s10, %s18_s10 }
   0x4   :  { %p1213_p0 = scmp.ne.s32.totalorder %s18_s10, %s1212_s11  ;;  %p1218_p2 = scmp.lt.s32.totalorder %s1212_s11, %s1212_s11 }
   0x6   :  { %p1219_p3 = por %p1218_p2, %p1217_p1 }
   0x8   :  { %p1220_p4 = pnand %p1219_p3, %p1213_p0 }
   0xa   :  { %1223 = shalt.err (!%p1220_p4)
}
   0xb   :  { %s1249_s12 = smov 512   ;;  %s1250_s13 = smov 32  }
   0xc   :  { %23 = dma.hbm_to_vmem [thread:$0]  %s1698_s1, 1024, %s18_s10, [#allocation4], %s1249_s12, %s1249_s12, %s1250_s13  }
   0xd   :  { %1244 = dma.done.wait [#allocation4], 1024  }
   0xe   :  { %1245 = vsyncadd [#allocation4], 4294966272  ;;  %v28_v0 = vlaneseq  ;;  %s43_s18 = sxor.u32 2654435769, %s1697_s0  ;;  %s1257_s0 = smov [#allocation6]  }
   0xf   :  { %v44_v7 = vstv %s43_s18  ;;  %s1102_s1 = sshll.u32 %s1257_s0, 4  ;;  %s1103_s1 = int_to_ptr.vmem [resolvable:$true] %s1102_s1 }
  0x10   :  { %v29_v1 = vshrl.u32 %v28_v0, 7  ;;  %v31_v2 = vand.u32 127, %v28_v0  ;;  %s1224_s19 = scalar_lea.vmem %s1103_s1, 1024  ;;  %p1229_p6 = scmp.lt.s32.totalorder %s1103_s1, %s1103_s1 }
  0x11   :  { %p1225_p5 = scmp.ne.s32.totalorder %s1103_s1, %s1224_s19  ;;  %p1230_p7 = scmp.lt.s32.totalorder %s1224_s19, %s1224_s19 }
  0x12   :  { %v32_v3 = vadd.s32 128, %v31_v2  ;;  %v33_v4 = vadd.s32 256, %v31_v2  ;;  %v34_v5 = vadd.s32 384, %v31_v2  ;;  %v36_v6 = vmul.u32 512, %v29_v1 }
  0x13   :  { %p1231_p8 = por %p1230_p7, %p1229_p6 }
  0x14   :  { %v39_v8 = vadd.s32 %v36_v6, %v31_v2  ;;  %v40_v9 = vadd.s32 %v36_v6, %v32_v3  ;;  %v41_v10 = vadd.s32 %v36_v6, %v33_v4  ;;  %v42_v11 = vadd.s32 %v36_v6, %v34_v5 }
  0x15   :  { %p1232_p9 = pnand %p1231_p8, %p1225_p5 }
  0x16   :  { %v45_v12 = vxor.u32 %v44_v7, %v39_v8  ;;  %v46_v13 = vxor.u32 %v44_v7, %v40_v9  ;;  %v47_v14 = vxor.u32 %v44_v7, %v41_v10  ;;  %v48_v15 = vxor.u32 %v44_v7, %v42_v11 }
  0x18   :  { %v49_v16 = vshrl.u32 %v45_v12, 16  ;;  %v50_v17 = vshrl.u32 %v46_v13, 16  ;;  %v51_v18 = vshrl.u32 %v47_v14, 16  ;;  %v52_v19 = vshrl.u32 %v48_v15, 16 }
  0x1a   :  { %v53_v20 = vxor.u32 %v49_v16, %v45_v12  ;;  %v54_v21 = vxor.u32 %v50_v17, %v46_v13  ;;  %v55_v22 = vxor.u32 %v51_v18, %v47_v14  ;;  %v56_v23 = vxor.u32 %v52_v19, %v48_v15 }
  0x1c   :  { %v57_v24 = vmul.u32 2146121005, %v53_v20  ;;  %v58_v25 = vmul.u32 2146121005, %v54_v21 }
  0x1d   :  { %v59_v26 = vmul.u32 2146121005, %v55_v22  ;;  %v60_v27 = vmul.u32 2146121005, %v56_v23 }
  0x1e   :  { %v61_v28 = vshrl.u32 %v57_v24, 15  ;;  %v62_v29 = vshrl.u32 %v58_v25, 15 }
  0x1f   :  { %v63_v30 = vshrl.u32 %v59_v26, 15  ;;  %v64_v31 = vshrl.u32 %v60_v27, 15 }
  0x20   :  { %v65_v32 = vxor.u32 %v61_v28, %v57_v24  ;;  %v66_v33 = vxor.u32 %v62_v29, %v58_v25 }
  0x21   :  { %v67_v34 = vxor.u32 %v63_v30, %v59_v26  ;;  %v68_v35 = vxor.u32 %v64_v31, %v60_v27 }
  0x22   :  { %v69_v36 = vmul.u32 2221713035, %v65_v32  ;;  %v70_v37 = vmul.u32 2221713035, %v66_v33 }
  0x23   :  { %v71_v38 = vmul.u32 2221713035, %v67_v34  ;;  %v72_v39 = vmul.u32 2221713035, %v68_v35 }
  0x24   :  { %v73_v40 = vshrl.u32 %v69_v36, 16  ;;  %v74_v41 = vshrl.u32 %v70_v37, 16 }
  0x25   :  { %v75_v42 = vshrl.u32 %v71_v38, 16  ;;  %v76_v43 = vshrl.u32 %v72_v39, 16 }
  0x26   :  { %v77_v44 = vxor.u32 %v73_v40, %v69_v36  ;;  %v78_v45 = vxor.u32 %v74_v41, %v70_v37 }
  0x27   :  { %v79_v46 = vxor.u32 %v75_v42, %v71_v38  ;;  %v80_v47 = vxor.u32 %v76_v43, %v72_v39 }
  0x28   :  { %v81_v48 = vxor.u32 2246822507, %v77_v44  ;;  %v82_v49 = vxor.u32 2246822507, %v78_v45  ;;  %v117_v50 = vxor.u32 3266489909, %v77_v44 }
  0x29   :  { %v83_v51 = vxor.u32 2246822507, %v79_v46  ;;  %v118_v52 = vxor.u32 3266489909, %v78_v45  ;;  %v119_v55 = vxor.u32 3266489909, %v79_v46 }
  0x2a   :  { %v85_v53 = vshrl.u32 %v81_v48, 16  ;;  %v86_v54 = vshrl.u32 %v82_v49, 16  ;;  %v120_v56 = vxor.u32 3266489909, %v80_v47  ;;  %v121_v58 = vxor.u32 668265263, %v117_v50 }
  0x2b   :  { %v87_v57 = vshrl.u32 %v83_v51, 16  ;;  %v122_v59 = vxor.u32 668265263, %v118_v52  ;;  %v123_v62 = vxor.u32 668265263, %v119_v55 }
  0x2c   :  { %v89_v60 = vxor.u32 %v85_v53, %v81_v48  ;;  %v90_v61 = vxor.u32 %v86_v54, %v82_v49  ;;  %v124_v63 = vxor.u32 668265263, %v120_v56  ;;  %v125_v1 = vshrl.u32 %v121_v58, 16 }
  0x2d   :  { %v91_v0 = vxor.u32 %v87_v57, %v83_v51  ;;  %v126_v2 = vshrl.u32 %v122_v59, 16  ;;  %v127_v4 = vshrl.u32 %v123_v62, 16  ;;  %v84_v16 = vxor.u32 2246822507, %v80_v47 }
  0x2e   :  { %v93_v3 = vmul.u32 2146121005, %v89_v60  ;;  %v94_v5 = vmul.u32 2146121005, %v90_v61  ;;  %v129_v6 = vxor.u32 %v125_v1, %v121_v58  ;;  %v128_v10 = vshrl.u32 %v124_v63, 16 }
  0x2f   :  { %v130_v7 = vxor.u32 %v126_v2, %v122_v59  ;;  %v95_v8 = vmul.u32 2146121005, %v91_v0  ;;  %v131_v11 = vxor.u32 %v127_v4, %v123_v62  ;;  %v88_v31 = vshrl.u32 %v84_v16, 16 }
  0x30   :  { %v97_v9 = vshrl.u32 %v93_v3, 15  ;;  %v133_v12 = vmul.u32 2146121005, %v129_v6  ;;  %v98_v17 = vshrl.u32 %v94_v5, 15  ;;  %v132_v22 = vxor.u32 %v128_v10, %v124_v63 }
  0x31   :  { %v134_v13 = vmul.u32 2146121005, %v130_v7  ;;  %v135_v15 = vmul.u32 2146121005, %v131_v11  ;;  %v99_v20 = vshrl.u32 %v95_v8, 15  ;;  %v92_v42 = vxor.u32 %v88_v31, %v84_v16 }
  0x32   :  { %v101_v14 = vxor.u32 %v97_v9, %v93_v3  ;;  %v137_v18 = vshrl.u32 %v133_v12, 15  ;;  %v102_v28 = vxor.u32 %v98_v17, %v94_v5  ;;  %v136_v34 = vmul.u32 2146121005, %v132_v22 }
  0x33   :  { %v138_v19 = vshrl.u32 %v134_v13, 15  ;;  %v139_v23 = vshrl.u32 %v135_v15, 15  ;;  %v103_v32 = vxor.u32 %v99_v20, %v95_v8  ;;  %v96_v53 = vmul.u32 2146121005, %v92_v42 }
  0x34   :  { %v105_v21 = vmul.u32 2221713035, %v101_v14  ;;  %v141_v24 = vxor.u32 %v137_v18, %v133_v12  ;;  %v106_v39 = vmul.u32 2221713035, %v102_v28  ;;  %v140_v44 = vshrl.u32 %v136_v34, 15 }
  0x35   :  { %v142_v25 = vxor.u32 %v138_v19, %v134_v13  ;;  %v143_v27 = vxor.u32 %v139_v23, %v135_v15  ;;  %v107_v43 = vmul.u32 2221713035, %v103_v32  ;;  %v100_v62 = vshrl.u32 %v96_v53, 15 }
  0x36   :  { %v109_v26 = vshrl.u32 %v105_v21, 16  ;;  %v145_v29 = vmul.u32 2221713035, %v141_v24  ;;  %v110_v50 = vshrl.u32 %v106_v39, 16  ;;  %v144_v55 = vxor.u32 %v140_v44, %v136_v34 }
  0x37   :  { %v146_v30 = vmul.u32 2221713035, %v142_v25  ;;  %v147_v35 = vmul.u32 2221713035, %v143_v27  ;;  %v111_v54 = vshrl.u32 %v107_v43, 16  ;;  %v104_v6 = vxor.u32 %v100_v62, %v96_v53 }
  0x38   :  { %v113_v33 = vxor.u32 %v109_v26, %v105_v21  ;;  %v149_v36 = vshrl.u32 %v145_v29, 16  ;;  %v114_v59 = vxor.u32 %v110_v50, %v106_v39  ;;  %v148_v0 = vmul.u32 2221713035, %v144_v55 }
  0x39   :  { %v150_v37 = vshrl.u32 %v146_v30, 16  ;;  %v151_v46 = vshrl.u32 %v147_v35, 16  ;;  %v115_v63 = vxor.u32 %v111_v54, %v107_v43  ;;  %v108_v16 = vmul.u32 2221713035, %v104_v6 }
  0x3a   :  { %v157_v38 = vshrl.u32 %v113_v33, 9  ;;  %v153_v40 = vxor.u32 %v149_v36, %v145_v29  ;;  %v158_v4 = vshrl.u32 %v114_v59, 9  ;;  %v152_v7 = vshrl.u32 %v148_v0, 16 }
  0x3b   :  { %v154_v41 = vxor.u32 %v150_v37, %v146_v30  ;;  %v155_v56 = vxor.u32 %v151_v46, %v147_v35  ;;  %v159_v8 = vshrl.u32 %v115_v63, 9  ;;  %v112_v26 = vshrl.u32 %v108_v16, 16 }
  0x3c   :  { %v161_v45 = vor.u32 1065353216, %v157_v38  ;;  %v173_v47 = vshrl.u32 %v153_v40, 9  ;;  %v162_v14 = vor.u32 1065353216, %v158_v4  ;;  %v156_v17 = vxor.u32 %v152_v7, %v148_v0 }
  0x3d   :  { %v174_v48 = vshrl.u32 %v154_v41, 9  ;;  %v175_v1 = vshrl.u32 %v155_v56, 9  ;;  %v163_v18 = vor.u32 1065353216, %v159_v8  ;;  %v1295_v34 = vxor.u32 %v112_v26, %v108_v16 }
  0x3e   :  { %v169_v49 = vsub.f32 2.0, %v161_v45  ;;  %v177_v51 = vor.u32 1065353216, %v173_v47  ;;  %v170_v24 = vsub.f32 2.0, %v162_v14  ;;  %v176_v28 = vshrl.u32 %v156_v17, 9 }
  0x3f   :  { %v178_v52 = vor.u32 1065353216, %v174_v48  ;;  %v179_v10 = vor.u32 1065353216, %v175_v1  ;;  %v171_v27 = vsub.f32 2.0, %v163_v18  ;;  %v1251_v36 = vmov 683565275  }
  0x40   :  { %v185_v57 = vsub.f32 2.0, %v177_v51  ;;  %1172 = vlog2.f32 %v169_v49  ;;  %v1297_v35 = vor.u32 1065353216, %v176_v28  ;;  %v1252_v44 = vmov 2475754826  }
  0x41   :  { %v186_v58 = vsub.f32 2.0, %v178_v52  ;;  %v187_v20 = vsub.f32 2.0, %v179_v10  ;;  %1174 = vlog2.f32 %v170_v24  ;;  %v1253_v48 = vmov 2131351028  }
  0x42   :  { %v1282_v60 = vmul.f32 6.2831855, %v185_v57  ;;  %1176 = vlog2.f32 %v171_v27  ;;  %v1254_v51 = vmov 2102212464   ;;  %v1255_v55 = vmov 920167782  }
  0x43   :  { %v1284_v61 = vmul.f32 6.2831855, %v186_v58  ;;  %v1291_v29 = vmul.f32 6.2831855, %v187_v20  ;;  %v1256_v62 = vmov 1326507024  }
  0x44   :  { %v240_v2 = vand.u32 2139095040, %v1282_v60  ;;  %v237_v11 = vand.u32 2147483647, %v1282_v60  ;;  %v188_v17 = vsub.f32 2.0, %v1297_v35 }
  0x45   :  { %v343_v3 = vand.u32 2139095040, %v1284_v61  ;;  %v340_v40 = vand.u32 2147483647, %v1284_v61  ;;  %v446_v41 = vand.u32 2139095040, %v1291_v29 }
  0x46   :  { %v241_v5 = vshrl.u32 %v240_v2, 23  ;;  %v244_v21 = vand.u32 8388607, %v237_v11 }
  0x47   :  { %v344_v9 = vshrl.u32 %v343_v3, 23  ;;  %v347_v6 = vand.u32 8388607, %v340_v40  ;;  %v447_v7 = vshrl.u32 %v446_v41, 23 }
  0x48   :  { %v1114_v12 = vadd.s32 4294967169, %v241_v5  ;;  %v245_v30 = vor.u32 8388608, %v244_v21 }
  0x49   :  { %v1118_v13 = vadd.s32 4294967169, %v344_v9  ;;  %v348_v27 = vor.u32 8388608, %v347_v6  ;;  %v1122_v28 = vadd.s32 4294967169, %v447_v7 }
  0x4a   :  { %v247_v15 = vadd.s32 1, %v1114_v12  ;;  %v1300_v39 = vshll.u32 %v245_v30, 8 }
  0x4b   :  { %v350_v19 = vadd.s32 1, %v1118_v13  ;;  %v160_v13 = vshrl.u32 %v1295_v34, 9 }
  0x4c   :  { %vm248_vm0 = vcmp.gt.s32.totalorder %v247_v15, 0 }
  0x4d   :  { %v249_v22 = vsel %vm248_vm0, %v247_v15, 0  ;;  %v1173_v23 = vpop.eup %1172  ;;  %vm351_vm1 = vcmp.gt.s32.totalorder %v350_v19, 0  ;;  %vm239_vm0 = vcmp.lt.s32.totalorder %v1282_v60, 0 }
  0x4e   :  { %v251_v25 = vand.u32 31, %v249_v22  ;;  %v190_v31 = vmul.f32 0.6931472, %v1173_v23  ;;  %v1293_v33 = vsel %vm351_vm1, %v350_v19, 0  ;;  %v250_v38 = vshrl.u32 %v249_v22, 5  ;;  %v1175_v21 = vpop.eup %1174 }
  0x4f   :  { %v1309_v46 = vand.u32 31, %v1293_v33  ;;  %v1177_v26 = vpop.eup %1176 }
  0x50   :  { %v252_v32 = vsub.s32 32, %v251_v25  ;;  %v254_v37 = vshll.u32 %v1251_v36, %v251_v25  ;;  %v1304_v42 = vmul.f32 -2.0, %v190_v31  ;;  %v257_v47 = vshll.u32 %v1252_v44, %v251_v25 }
  0x51   :  { %v260_v50 = vshll.u32 %v1253_v48, %v251_v25  ;;  %v263_v54 = vshll.u32 %v1254_v51, %v251_v25  ;;  %v266_v57 = vshll.u32 %v1255_v55, %v251_v25  ;;  %vm269_vm2 = vcmp.lt.s32.totalorder %v250_v38, 1 }
  0x52   :  { %v253_v43 = vshrl.u32 %v1251_v36, %v252_v32  ;;  %v255_v45 = vshrl.u32 %v1252_v44, %v252_v32  ;;  %v258_v49 = vshrl.u32 %v1253_v48, %v252_v32  ;;  %v261_v52 = vshrl.u32 %v1254_v51, %v252_v32 }
  0x53   :  { %v264_v56 = vshrl.u32 %v1255_v55, %v252_v32  ;;  %v267_v63 = vshrl.u32 %v1256_v62, %v252_v32  ;;  %1178 = vrsqrt.f32 %v1304_v42  ;;  %vm271_vm3 = vcmp.lt.s32.totalorder %v250_v38, 3 }
  0x54   :  { %v256_v53 = vor.u32 %v255_v45, %v254_v37  ;;  %v259_v58 = vor.u32 %v258_v49, %v257_v47  ;;  %v262_v59 = vor.u32 %v261_v52, %v260_v50  ;;  %vm272_vm4 = vcmp.lt.s32.totalorder %v250_v38, 4 }
  0x55   :  { %v265_v0 = vor.u32 %v264_v56, %v263_v54  ;;  %v268_v1 = vor.u32 %v267_v63, %v266_v57  ;;  %vm270_vm5 = vcmp.lt.s32.totalorder %v250_v38, 2  ;;  %v355_v16 = vsub.s32 32, %v1309_v46 }
  0x56   :  { %v274_v2 = vsel %vm272_vm4, %v262_v59, 2102212464  ;;  %v277_v3 = vsel %vm269_vm2, %v256_v53, %v259_v58  ;;  %v281_v5 = vsel %vm269_vm2, %v259_v58, %v262_v59  ;;  %v273_v8 = vsel %vm269_vm2, %v253_v43, %v256_v53 }
  0x57   :  { %v278_v4 = vsel %vm272_vm4, %v265_v0, 920167782  ;;  %v275_v9 = vsel %vm271_vm3, %v259_v58, %v274_v2  ;;  %v282_v12 = vsel %vm272_vm4, %v268_v1, 1326507024  ;;  %v443_v25 = vand.u32 2147483647, %v1291_v29 }
  0x58   :  { %v279_v10 = vsel %vm271_vm3, %v262_v59, %v278_v4  ;;  %v283_v15 = vsel %vm271_vm3, %v265_v0, %v282_v12  ;;  %v276_v22 = vsel %vm270_vm5, %v273_v8, %v275_v9  ;;  %v357_v30 = vshll.u32 %v1251_v36, %v1309_v46 }
  0x59   :  { %v280_v14 = vsel %vm270_vm5, %v277_v3, %v279_v10  ;;  %v284_v18 = vsel %vm270_vm5, %v281_v5, %v283_v15  ;;  %v358_v31 = vshrl.u32 %v1252_v44, %v355_v16  ;;  %v360_v32 = vshll.u32 %v1252_v44, %v1309_v46 }
  0x5a   :  { %v1331_v19 = vmul.u32.u64.low %v1300_v39, %v280_v14  ;;  %v1332_v20 = vmul.u32.u64.high %v1300_v39, %v280_v14, %v1331_v19  ;;  %v1337_v23 = vmul.u32.u64.low %v1300_v39, %v284_v18  ;;  %v1338_v24 = vmul.u32.u64.high %v1300_v39, %v284_v18, %v1337_v23 }
  0x5b   :  { %v361_v34 = vshrl.u32 %v1253_v48, %v355_v16  ;;  %v292_v35 = vmul.u32 %v1300_v39, %v276_v22  ;;  %v363_v38 = vshll.u32 %v1253_v48, %v1309_v46  ;;  %v364_v41 = vshrl.u32 %v1254_v51, %v355_v16 }
  0x5c   :  { %v295_v37 = vadd.s32 1, %v1332_v20  ;;  %v1352_v43 = vor.u32 1065353216, %v160_v13  ;;  %v1354_v45 = vmul.f32 6.2831855, %v188_v17  ;;  %v353_v47 = vshrl.u32 %v1293_v33, 5 }
  0x5d   :  { %v1359_v49 = vand.u32 8388607, %v443_v25  ;;  %vm294_vm6 = vc.u32 %v1338_v24, %v1331_v19  ;;  %v366_v39 = vshll.u32 %v1254_v51, %v1309_v46  ;;  %v1365_v50 = vshll.u32 %v348_v27, 8 }
  0x5e   :  { %v453_v52 = vadd.s32 1, %v1122_v28  ;;  %v192_v53 = vmul.f32 0.6931472, %v1175_v21  ;;  %v296_v54 = vsel %vm294_vm6, %v295_v37, %v1332_v20  ;;  %v359_v56 = vor.u32 %v358_v31, %v357_v30 }
  0x5f   :  { %v362_v57 = vor.u32 %v361_v34, %v360_v32  ;;  %v194_v33 = vmul.f32 0.6931472, %v1177_v26  ;;  %v297_v59 = vadd.s32 %v296_v54, %v292_v35  ;;  %v365_v63 = vor.u32 %v364_v41, %v363_v38 }
  0x60   :  { %v1179_v58 = vpop.eup %1178  ;;  %v367_v0 = vshrl.u32 %v1255_v55, %v355_v16  ;;  %v356_v1 = vshrl.u32 %v1251_v36, %v355_v16  ;;  %v369_v2 = vshll.u32 %v1255_v55, %v1309_v46  ;;  %v370_v3 = vshrl.u32 %v1256_v62, %v355_v16 }
  0x61   :  { %vm372_vm7 = vcmp.lt.s32.totalorder %v353_v47, 1  ;;  %v298_v4 = vadd.s32 536870912, %v297_v59  ;;  %vm374_vm8 = vcmp.lt.s32.totalorder %v353_v47, 3  ;;  %vm375_vm9 = vcmp.lt.s32.totalorder %v353_v47, 4 }
  0x62   :  { %v368_v5 = vor.u32 %v367_v0, %v366_v39  ;;  %v371_v6 = vor.u32 %v370_v3, %v369_v2  ;;  %vm373_vm10 = vcmp.lt.s32.totalorder %v353_v47, 2  ;;  %v377_v7 = vsel %vm375_vm9, %v365_v63, 2102212464 }
  0x63   :  { %v380_v8 = vsel %vm372_vm7, %v359_v56, %v362_v57  ;;  %v202_v9 = vmul.f32 %v1179_v58, %v1304_v42  ;;  %v1374_v10 = vshrl.u32 %v298_v4, 30  ;;  %v384_v13 = vsel %vm372_vm7, %v362_v57, %v365_v63 }
  0x64   :  { %v381_v12 = vsel %vm375_vm9, %v368_v5, 920167782  ;;  %v376_v14 = vsel %vm372_vm7, %v356_v1, %v359_v56  ;;  %v378_v46 = vsel %vm374_vm8, %v362_v57, %v377_v7  ;;  %v385_v16 = vsel %vm375_vm9, %v371_v6, 1326507024 }
  0x65   :  { %v382_v15 = vsel %vm374_vm8, %v365_v63, %v381_v12  ;;  %v300_v17 = vshll.u32 %v1374_v10, 30  ;;  %v386_v20 = vsel %vm374_vm8, %v368_v5, %v385_v16  ;;  %vm454_vm11 = vcmp.gt.s32.totalorder %v453_v52, 0 }
  0x66   :  { %v383_v18 = vsel %vm373_vm10, %v380_v8, %v382_v15  ;;  %vm203_vm12 = vcmp.eq.f32.partialorder %v1304_v42, inf  ;;  %v387_v21 = vsel %vm373_vm10, %v384_v13, %v386_v20  ;;  %v379_v27 = vsel %vm373_vm10, %v376_v14, %v378_v46 }
  0x67   :  { %v1384_v22 = vmul.u32.u64.low %v1365_v50, %v383_v18  ;;  %v1385_v23 = vmul.u32.u64.high %v1365_v50, %v383_v18, %v1384_v22  ;;  %v1388_v26 = vsub.s32 %v297_v59, %v300_v17  ;;  %v1395_v31 = vmul.f32 -2.0, %v192_v53 }
  0x68   :  { %v1392_v28 = vmul.u32.u64.low %v1365_v50, %v387_v21  ;;  %v1393_v30 = vmul.u32.u64.high %v1365_v50, %v387_v21, %v1392_v28  ;;  %v206_v32 = vand.u32 2147483648, %v1304_v42  ;;  %v455_v34 = vsel %vm454_vm11, %v453_v52, 0 }
  0x69   :  { %v204_v35 = vsel %vm203_vm12, %v1304_v42, %v202_v9  ;;  %vm205_vm13 = vcmp.eq.f32.partialorder %v1304_v42, 0.0  ;;  %v303_v37 = vsub.s32 0, %v1388_v26  ;;  %v457_v38 = vand.u32 31, %v455_v34 }
  0x6a   :  { %v172_v41 = vsub.f32 2.0, %v1352_v43  ;;  %v395_v47 = vmul.u32 %v1365_v50, %v379_v27  ;;  %v398_v39 = vadd.s32 1, %v1385_v23  ;;  %v546_v54 = vand.u32 2147483647, %v1354_v45 }
  0x6b   :  { %v1405_v53 = vmul.f32 -2.0, %v194_v33  ;;  %v1115_v56 = vmin.u32 %v303_v37, %v1388_v26  ;;  %v451_v52 = vor.u32 8388608, %v1359_v49  ;;  %v549_v57 = vand.u32 2139095040, %v1354_v45 }
  0x6c   :  { %v1410_v42 = vsel %vm205_vm13, %v206_v32, %v204_v35  ;;  %1180 = vrsqrt.f32 %v1395_v31  ;;  %vm397_vm14 = vc.u32 %v1393_v30, %v1384_v22  ;;  %v458_v50 = vsub.s32 32, %v457_v38 }
  0x6d   :  { %v293_v58 = vadd.s32 %v1331_v19, %v1338_v24  ;;  %v305_v59 = vclz %v1115_v56  ;;  %v323_v33 = vsub.s32 4, %v1374_v10  ;;  %v399_v63 = vsel %vm397_vm14, %v398_v39, %v1385_v23 }
  0x6e   :  { %v400_v0 = vadd.s32 %v399_v63, %v395_v47  ;;  %v1419_v49 = vshrl.u32 %v455_v34, 5  ;;  %v460_v1 = vshll.u32 %v1251_v36, %v457_v38  ;;  %v461_v2 = vshrl.u32 %v1252_v44, %v458_v50 }
  0x6f   :  { %v1116_v3 = vadd.s32 4294967294, %v305_v59  ;;  %v463_v4 = vshll.u32 %v1252_v44, %v457_v38  ;;  %v464_v5 = vshrl.u32 %v1253_v48, %v458_v50  ;;  %v466_v6 = vshll.u32 %v1253_v48, %v457_v38 }
  0x70   :  { %v401_v19 = vadd.s32 536870912, %v400_v0  ;;  %v467_v24 = vshrl.u32 %v1254_v51, %v458_v50  ;;  %v469_v7 = vshll.u32 %v1254_v51, %v457_v38  ;;  %v470_v8 = vshrl.u32 %v1255_v55, %v458_v50 }
  0x71   :  { %vm1117_vm15 = vcmp.lt.s32.totalorder %v1116_v3, 0  ;;  %v472_v9 = vshll.u32 %v1255_v55, %v457_v38  ;;  %v473_v12 = vshrl.u32 %v1256_v62, %v458_v50  ;;  %v1431_v13 = vshll.u32 %v451_v52, 8 }
  0x72   :  { %v308_v14 = vsel %vm1117_vm15, 0, %v1116_v3  ;;  %v402_v46 = vshrl.u32 %v401_v19, 30  ;;  %v462_v15 = vor.u32 %v461_v2, %v460_v1  ;;  %v550_v16 = vshrl.u32 %v549_v57, 23 }
  0x73   :  { %v309_v17 = vsub.s32 32, %v308_v14  ;;  %v310_v18 = vshll.u32 %v1388_v26, %v308_v14  ;;  %v313_v20 = vsub.s32 4294967266, %v308_v14  ;;  %v465_v21 = vor.u32 %v464_v5, %v463_v4 }
  0x74   :  { %v403_v23 = vshll.u32 %v402_v46, 30  ;;  %v468_v27 = vor.u32 %v467_v24, %v466_v6  ;;  %v471_v28 = vor.u32 %v470_v8, %v469_v7  ;;  %vm475_vm1 = vcmp.lt.s32.totalorder %v1419_v49, 1 }
  0x75   :  { %vm1438_vm2 = vcmp.le.f32.partialorder %v237_v11, 0.7853982  ;;  %v311_v34 = vshrl.u32 %v293_v58, %v309_v17  ;;  %v314_v35 = vadd.s32 127, %v313_v20  ;;  %vm342_vm3 = vcmp.lt.s32.totalorder %v1284_v61, 0 }
  0x76   :  { %v474_v37 = vor.u32 %v473_v12, %v472_v9  ;;  %vm478_vm4 = vcmp.lt.s32.totalorder %v1419_v49, 4  ;;  %v1444_v26 = vsub.s32 %v400_v0, %v403_v23  ;;  %v459_v38 = vshrl.u32 %v1251_v36, %v458_v50 }
  0x77   :  { %vm477_vm5 = vcmp.lt.s32.totalorder %v1419_v49, 3  ;;  %v1126_v47 = vadd.s32 4294967169, %v550_v16  ;;  %v312_v39 = vor.u32 %v311_v34, %v310_v18  ;;  %v315_v56 = vshll.u32 %v314_v35, 23 }
  0x78   :  { %vm476_vm6 = vcmp.lt.s32.totalorder %v1419_v49, 2  ;;  %v480_v11 = vsel %vm478_vm4, %v468_v27, 2102212464  ;;  %vm1453_vm7 = vcmp.le.f32.partialorder %v340_v40, 0.7853982  ;;  %v406_v57 = vsub.s32 0, %v1444_v26 }
  0x79   :  { %v483_v50 = vsel %vm475_vm1, %v462_v15, %v465_v21  ;;  %v484_v58 = vsel %vm478_vm4, %v471_v28, 920167782  ;;  %v487_v59 = vsel %vm475_vm1, %v465_v21, %v468_v27  ;;  %v1181_v63 = vpop.eup %1180  ;;  %v316_v0 = vor.u32 4788187, %v315_v56 }
  0x7a   :  { %v319_v1 = vcvt.s32.f32 %v312_v39  ;;  %v485_v40 = vsel %vm477_vm5, %v468_v27, %v484_v58  ;;  %v488_v2 = vsel %vm478_vm4, %v474_v37, 1326507024  ;;  %v1119_v3 = vmin.u32 %v406_v57, %v1444_v26 }
  0x7b   :  { %v426_v4 = vsub.s32 4, %v402_v46  ;;  %v479_v5 = vsel %vm475_vm1, %v459_v38, %v462_v15  ;;  %v481_v6 = vsel %vm477_vm5, %v465_v21, %v480_v11  ;;  %v317_v19 = vand.u32 2147483647, %v316_v0 }
  0x7c   :  { %v324_v24 = vsel %vm239_vm0, %v323_v33, %v1374_v10  ;;  %v486_v7 = vsel %vm476_vm6, %v483_v50, %v485_v40  ;;  %v489_v8 = vsel %vm477_vm5, %v471_v28, %v488_v2  ;;  %v408_v9 = vclz %v1119_v3 }
  0x7d   :  { %v490_v12 = vsel %vm476_vm6, %v487_v59, %v489_v8  ;;  %v1483_v14 = vmul.u32.u64.low %v1431_v13, %v486_v7  ;;  %v1484_v15 = vmul.u32.u64.high %v1431_v13, %v486_v7, %v1483_v14  ;;  %v320_v16 = vmul.f32 %v319_v1, %v317_v19 }
  0x7e   :  { %v482_v17 = vsel %vm476_vm6, %v479_v5, %v481_v6  ;;  %v1490_v10 = vmul.u32.u64.low %v1431_v13, %v490_v12  ;;  %v1491_v33 = vmul.u32.u64.high %v1431_v13, %v490_v12, %v1490_v10  ;;  %v326_v18 = vsel %vm1438_vm2, 0, %v324_v24 }
  0x7f   :  { %v1120_v20 = vadd.s32 4294967294, %v408_v9  ;;  %v427_v21 = vsel %vm342_vm3, %v426_v4, %v402_v46  ;;  %v556_v23 = vadd.s32 1, %v1126_v47  ;;  %v321_v27 = vxor.u32 2147483648, %v320_v16 }
  0x80   :  { %v1497_v28 = vand.u32 3, %v326_v18  ;;  %v396_v34 = vadd.s32 %v1384_v22, %v1393_v30  ;;  %v553_v49 = vand.u32 8388607, %v546_v54  ;;  %v498_v35 = vmul.u32 %v1431_v13, %v482_v17 }
  0x81   :  { %vm1121_vm8 = vcmp.lt.s32.totalorder %v1120_v20, 0  ;;  %v501_v37 = vadd.s32 1, %v1484_v15  ;;  %vm557_vm9 = vcmp.gt.s32.totalorder %v556_v23, 0  ;;  %v322_v38 = vsel %vm239_vm0, %v321_v27, %v320_v16 }
  0x82   :  { %v411_v46 = vsel %vm1121_vm8, 0, %v1120_v20  ;;  %v1509_v47 = vsel %vm1453_vm7, 0, %v427_v21  ;;  %vm500_vm10 = vc.u32 %v1491_v33, %v1483_v14  ;;  %v325_v22 = vsel %vm1438_vm2, %v1282_v60, %v322_v38 }
  0x83   :  { %v412_v30 = vsub.s32 32, %v411_v46  ;;  %v413_v13 = vshll.u32 %v1444_v26, %v411_v46  ;;  %v416_v39 = vsub.s32 4294967266, %v411_v46  ;;  %1182 = vcosq.f32 %v325_v22 }
  0x84   :  { %v502_v56 = vsel %vm500_vm10, %v501_v37, %v1484_v15  ;;  %v558_v11 = vsel %vm557_vm9, %v556_v23, 0  ;;  %v746_v57 = vadd.s32 3, %v326_v18  ;;  %1184 = vsinq.f32 %v325_v22 }
  0x85   :  { %v414_v50 = vshrl.u32 %v396_v34, %v412_v30  ;;  %v417_v58 = vadd.s32 127, %v416_v39  ;;  %v503_v59 = vadd.s32 %v502_v56, %v498_v35  ;;  %v1519_v0 = vmul.f32 %v1181_v63, %v1395_v31 }
  0x86   :  { %v213_v1 = vand.u32 2147483648, %v1395_v31  ;;  %1186 = vrsqrt.f32 %v1405_v53  ;;  %v560_v32 = vand.u32 31, %v558_v11  ;;  %v1524_v26 = vmul.f32 0.05, %v1410_v42 }
  0x87   :  { %v415_v40 = vor.u32 %v414_v50, %v413_v13  ;;  %v418_v2 = vshll.u32 %v417_v58, 23  ;;  %v504_v3 = vadd.s32 536870912, %v503_v59  ;;  %v554_v4 = vor.u32 8388608, %v553_v49 }
  0x88   :  { %v561_v5 = vsub.s32 32, %v560_v32  ;;  %v1526_v6 = vand.u32 3, %v746_v57  ;;  %v1529_v19 = vadd.s32 3, %v1509_v47  ;;  %vm335_vm11 = vcmp.eq.s32.totalorder %v1497_v28, 2 }
  0x89   :  { %v419_v63 = vor.u32 4788187, %v418_v2  ;;  %v422_v24 = vcvt.s32.f32 %v415_v40  ;;  %v1532_v7 = vshrl.u32 %v504_v3, 30  ;;  %v1534_v8 = vshrl.u32 %v558_v11, 5 }
  0x8a   :  { %vm332_vm12 = vcmp.eq.s32.totalorder %v1497_v28, 0  ;;  %v563_v42 = vshll.u32 %v1251_v36, %v560_v32  ;;  %v564_v9 = vshrl.u32 %v1252_v44, %v561_v5  ;;  %v566_v12 = vshll.u32 %v1252_v44, %v560_v32 }
  0x8b   :  { %v567_v15 = vshrl.u32 %v1253_v48, %v561_v5  ;;  %vm331_vm13 = vcmp.lt.s32.totalorder %v1497_v28, 2  ;;  %v420_v16 = vand.u32 2147483647, %v419_v63  ;;  %v506_v17 = vshll.u32 %v1532_v7, 30 }
  0x8c   :  { %v569_v10 = vshll.u32 %v1253_v48, %v560_v32  ;;  %v570_v18 = vshrl.u32 %v1254_v51, %v561_v5  ;;  %vm329_vm14 = vweird.f32 %v1282_v60  ;;  %v572_v20 = vshll.u32 %v1254_v51, %v560_v32 }
  0x8d   :  { %v573_v21 = vshrl.u32 %v1255_v55, %v561_v5  ;;  %v575_v23 = vshll.u32 %v1255_v55, %v560_v32  ;;  %v1549_v44 = vshll.u32 %v554_v4, 8  ;;  %v423_v27 = vmul.f32 %v422_v24, %v420_v16 }
  0x8e   :  { %v499_v34 = vadd.s32 %v1483_v14, %v1491_v33  ;;  %v1553_v49 = vsub.s32 %v503_v59, %v506_v17  ;;  %v562_v48 = vshrl.u32 %v1251_v36, %v561_v5  ;;  %v565_v35 = vor.u32 %v564_v9, %v563_v42 }
  0x8f   :  { %v568_v37 = vor.u32 %v567_v15, %v566_v12  ;;  %v576_v38 = vshrl.u32 %v1256_v62, %v561_v5  ;;  %vm749_vm15 = vcmp.eq.s32.totalorder %v1526_v6, 0  ;;  %vm210_vm0 = vcmp.eq.f32.partialorder %v1395_v31, inf }
  0x90   :  { %v424_v51 = vxor.u32 2147483648, %v423_v27  ;;  %v509_v55 = vsub.s32 0, %v1553_v49  ;;  %v571_v46 = vor.u32 %v570_v18, %v569_v10  ;;  %vm578_vm1 = vcmp.lt.s32.totalorder %v1534_v8, 1  ;;  %v1183_v36 = vpop.eup %1182 }
  0x91   :  { %v574_v22 = vor.u32 %v573_v21, %v572_v20  ;;  %v577_v14 = vor.u32 %v576_v38, %v575_v23  ;;  %vm579_vm2 = vcmp.lt.s32.totalorder %v1534_v8, 2  ;;  %vm580_vm4 = vcmp.lt.s32.totalorder %v1534_v8, 3  ;;  %v1185_v13 = vpop.eup %1184  ;;  %v1073_v38 = vld [vmem:[#allocation3] sm:$0xff] }
  0x92   :  { %vm748_vm5 = vcmp.lt.s32.totalorder %v1526_v6, 2  ;;  %v425_v62 = vsel %vm342_vm3, %v424_v51, %v423_v27  ;;  %v1123_v33 = vmin.u32 %v509_v55, %v1553_v49  ;;  %vm581_vm6 = vcmp.lt.s32.totalorder %v1534_v8, 4 }
  0x93   :  { %v582_v30 = vsel %vm578_vm1, %v562_v48, %v565_v35  ;;  %v336_v39 = vxor.u32 2147483648, %v1183_v36  ;;  %v428_v56 = vsel %vm1453_vm7, %v1284_v61, %v425_v62  ;;  %v583_v11 = vsel %vm581_vm6, %v571_v46, 2102212464  ;;  %v1577_v50 = vpop.eup %1186  ;;  %v1085_v62 = vld [vmem:[#allocation3 + $0x20] sm:$0xff] }
  0x94   :  { %v586_v57 = vsel %vm578_vm1, %v565_v35, %v568_v37  ;;  %v333_v58 = vxor.u32 2147483648, %v1185_v13  ;;  %1188 = vcosq.f32 %v428_v56  ;;  %v511_v59 = vclz %v1123_v33 }
  0x95   :  { %v584_v32 = vsel %vm580_vm4, %v568_v37, %v583_v11  ;;  %v337_v40 = vsel %vm335_vm11, %v336_v39, %v1185_v13  ;;  %1190 = vsinq.f32 %v428_v56  ;;  %v587_v52 = vsel %vm581_vm6, %v574_v22, 920167782 }
  0x96   :  { %vm752_vm3 = vcmp.eq.s32.totalorder %v1526_v6, 2  ;;  %vm212_vm7 = vcmp.eq.f32.partialorder %v1395_v31, 0.0  ;;  %v334_v2 = vsel %vm332_vm12, %v1183_v36, %v333_v58  ;;  %v1124_v3 = vadd.s32 4294967294, %v511_v59 }
  0x97   :  { %v588_v4 = vsel %vm580_vm4, %v571_v46, %v587_v52  ;;  %v590_v5 = vsel %vm578_vm1, %v568_v37, %v571_v46  ;;  %v338_v63 = vsel %vm331_vm13, %v334_v2, %v337_v40  ;;  %v585_v24 = vsel %vm579_vm2, %v582_v30, %v584_v32 }
  0x98   :  { %v589_v42 = vsel %vm579_vm2, %v586_v57, %v588_v4  ;;  %v591_v9 = vsel %vm581_vm6, %v577_v14, 1326507024  ;;  %v339_v12 = vsel %vm329_vm14, nan, %v338_v63  ;;  %vm1125_vm8 = vcmp.lt.s32.totalorder %v1124_v3, 0 }
  0x99   :  { %v592_v15 = vsel %vm580_vm4, %v574_v22, %v591_v9  ;;  %v751_v28 = vsel %vm749_vm15, %v1183_v36, %v333_v58  ;;  %v514_v16 = vsel %vm1125_vm8, 0, %v1124_v3  ;;  %v649_v27 = vmul.f32 %v339_v12, %v1524_v26  ;;  %v1074_v12 = vld [vmem:[#allocation3 + $0x8] sm:$0xff] }
  0x9a   :  { %v593_v17 = vsel %vm579_vm2, %v590_v5, %v592_v15  ;;  %v1610_v10 = vmul.u32.u64.low %v1549_v44, %v589_v42  ;;  %v1611_v18 = vmul.u32.u64.high %v1549_v44, %v589_v42, %v1610_v10  ;;  %v515_v20 = vsub.s32 32, %v514_v16  ;;  %v1086_v15 = vld [vmem:[#allocation3 + $0x28] sm:$0xff] }
  0x9b   :  { %v516_v21 = vshll.u32 %v1553_v49, %v514_v16  ;;  %v519_v23 = vsub.s32 4294967266, %v514_v16  ;;  %v211_v48 = vsel %vm210_vm0, %v1395_v31, %v1519_v0  ;;  %v754_v37 = vsel %vm752_vm3, %v336_v39, %v1185_v13 }
  0x9c   :  { %v1621_v35 = vmul.u32.u64.low %v1549_v44, %v593_v17  ;;  %v1622_v8 = vmul.u32.u64.high %v1549_v44, %v593_v17, %v1621_v35  ;;  %v433_v51 = vand.u32 3, %v1509_v47  ;;  %v517_v55 = vshrl.u32 %v499_v34, %v515_v20 }
  0x9d   :  { %v520_v49 = vadd.s32 127, %v519_v23  ;;  %v755_v46 = vsel %vm748_vm5, %v751_v28, %v754_v37  ;;  %v601_v22 = vmul.u32 %v1549_v44, %v585_v24  ;;  %v604_v14 = vadd.s32 1, %v1611_v18 }
  0x9e   :  { %v756_v0 = vsel %vm329_vm14, nan, %v755_v46  ;;  %v851_v36 = vand.u32 3, %v1529_v19  ;;  %v518_v33 = vor.u32 %v517_v55, %v516_v21  ;;  %v1077_v47 = vadd.f32 %v1073_v38, %v649_v27 }
  0x9f   :  { %v521_v30 = vshll.u32 %v520_v49, 23  ;;  %v1069_v13 = vmul.f32 %v756_v0, %v1524_v26  ;;  %1192 = vlog2.f32 %v172_v41  ;;  %vm432_vm9 = vweird.f32 %v1284_v61 }
  0xa0   :  { %vm445_vm10 = vcmp.lt.s32.totalorder %v1291_v29, 0  ;;  %vm603_vm11 = vc.u32 %v1622_v8, %v1610_v10  ;;  %v525_v6 = vcvt.s32.f32 %v518_v33  ;;  %1081 = vst [vmem:[#allocation6] sm:$0xff] %v1077_v47  ;;  %v214_v43 = vsel %vm212_vm7, %v213_v1, %v211_v48 }
  0xa1   :  { %v522_v60 = vor.u32 4788187, %v521_v30  ;;  %v605_v19 = vsel %vm603_vm11, %v604_v14, %v1611_v18  ;;  %v1089_v44 = vadd.f32 %v1085_v62, %v1069_v13  ;;  %v1189_v34 = vpop.eup %1188  ;;  %vm438_vm12 = vcmp.eq.s32.totalorder %v433_v51, 2 }
  0xa2   :  { %v606_v41 = vadd.s32 %v605_v19, %v601_v22  ;;  %vm856_vm13 = vcmp.eq.s32.totalorder %v851_v36, 2  ;;  %v1191_v26 = vpop.eup %1190  ;;  %vm435_vm14 = vcmp.eq.s32.totalorder %v433_v51, 0  ;;  %v439_v39 = vxor.u32 2147483648, %v1189_v34 }
  0xa3   :  { %v523_v56 = vand.u32 2147483647, %v522_v60  ;;  %vm853_vm15 = vcmp.eq.s32.totalorder %v851_v36, 0  ;;  %1093 = vst [vmem:[#allocation6 + $0x20] sm:$0xff] %v1089_v44  ;;  %vm434_vm0 = vcmp.lt.s32.totalorder %v433_v51, 2  ;;  %v436_v11 = vxor.u32 2147483648, %v1191_v26 }
  0xa4   :  { %v607_v57 = vadd.s32 536870912, %v606_v41  ;;  %vm852_vm1 = vcmp.lt.s32.totalorder %v851_v36, 2  ;;  %v230_v58 = vmul.f32 0.05, %v214_v43  ;;  %v440_v59 = vsel %vm438_vm12, %v439_v39, %v1191_v26 }
  0xa5   :  { %v526_v32 = vmul.f32 %v525_v6, %v523_v56  ;;  %v858_v40 = vsel %vm856_vm13, %v439_v39, %v1191_v26  ;;  %v437_v52 = vsel %vm435_vm14, %v1189_v34, %v436_v11  ;;  %v529_v31 = vsub.s32 4, %v1532_v7 }
  0xa6   :  { %v1647_v1 = vshrl.u32 %v607_v57, 30  ;;  %v855_v2 = vsel %vm853_vm15, %v1189_v34, %v436_v11  ;;  %v441_v3 = vsel %vm434_vm0, %v437_v52, %v440_v59  ;;  %vm1651_vm2 = vcmp.le.f32.partialorder %v443_v25, 0.7853982  ;;  %v1075_v52 = vld [vmem:[#allocation3 + $0x10] sm:$0xff] }
  0xa7   :  { %v527_v5 = vxor.u32 2147483648, %v526_v32  ;;  %v859_v63 = vsel %vm852_vm1, %v855_v2, %v858_v40  ;;  %v442_v24 = vsel %vm432_vm9, nan, %v441_v3  ;;  %v530_v17 = vsel %vm445_vm10, %v529_v31, %v1532_v7  ;;  %v1087_v31 = vld [vmem:[#allocation3 + $0x30] sm:$0xff] }
  0xa8   :  { %v609_v42 = vshll.u32 %v1647_v1, 30  ;;  %v860_v9 = vsel %vm432_vm9, nan, %v859_v63  ;;  %v650_v16 = vmul.f32 %v442_v24, %v230_v58  ;;  %v532_v48 = vsel %vm1651_vm2, 0, %v530_v17 }
  0xa9   :  { %v528_v28 = vsel %vm445_vm10, %v527_v5, %v526_v32  ;;  %v1070_v25 = vmul.f32 %v860_v9, %v230_v58  ;;  %v216_v7 = vmul.f32 %v1577_v50, %v1405_v53  ;;  %vm217_vm4 = vcmp.eq.f32.partialorder %v1405_v53, inf }
  0xaa   :  { %v531_v18 = vsel %vm1651_vm2, %v1291_v29, %v528_v28  ;;  %v610_v20 = vsub.s32 %v606_v41, %v609_v42  ;;  %v1078_v21 = vadd.f32 %v1074_v12, %v650_v16  ;;  %v954_v38 = vadd.s32 3, %v532_v48 }
  0xab   :  { %1194 = vcosq.f32 %v531_v18  ;;  %v1090_v61 = vadd.f32 %v1086_v15, %v1070_v25  ;;  %v218_v49 = vsel %vm217_vm4, %v1405_v53, %v216_v7  ;;  %vm219_vm5 = vcmp.eq.f32.partialorder %v1405_v53, 0.0 }
  0xac   :  { %1196 = vsinq.f32 %v531_v18  ;;  %v612_v23 = vsub.s32 0, %v610_v20  ;;  %v1193_v27 = vpop.eup %1192  ;;  %1082 = vst [vmem:[#allocation6 + $0x8] sm:$0xff] %v1078_v21  ;;  %v220_v46 = vand.u32 2147483648, %v1405_v53  ;;  %v536_v22 = vand.u32 3, %v532_v48 }
  0xad   :  { %1094 = vst [vmem:[#allocation6 + $0x28] sm:$0xff] %v1090_v61  ;;  %v196_v55 = vmul.f32 0.6931472, %v1193_v27  ;;  %v602_v14 = vadd.s32 %v1610_v10, %v1622_v8  ;;  %v955_v0 = vand.u32 3, %v954_v38  ;;  %vm535_vm3 = vweird.f32 %v1291_v29 }
  0xae   :  { %v1127_v35 = vmin.u32 %v612_v23, %v610_v20  ;;  %v221_v13 = vsel %vm219_vm5, %v220_v46, %v218_v49  ;;  %vm541_vm7 = vcmp.eq.s32.totalorder %v536_v22, 2  ;;  %vm537_vm9 = vcmp.lt.s32.totalorder %v536_v22, 2 }
  0xaf   :  { %v200_v30 = vmul.f32 -2.0, %v196_v55  ;;  %vm960_vm8 = vcmp.eq.s32.totalorder %v955_v0, 2  ;;  %vm538_vm10 = vcmp.eq.s32.totalorder %v536_v22, 0  ;;  %vm957_vm11 = vcmp.eq.s32.totalorder %v955_v0, 0  ;;  %v1076_v22 = vld [vmem:[#allocation3 + $0x18] sm:$0xff] }
  0xb0   :  { %v614_v37 = vclz %v1127_v35  ;;  %vm956_vm12 = vcmp.lt.s32.totalorder %v955_v0, 2  ;;  %v231_v34 = vmul.f32 0.05, %v221_v13  ;;  %vm548_vm13 = vcmp.lt.s32.totalorder %v1354_v45, 0 }
  0xb1   :  { %1198 = vrsqrt.f32 %v200_v30  ;;  %v632_v5 = vsub.s32 4, %v1647_v1  ;;  %vm547_vm14 = vcmp.le.f32.partialorder %v546_v54, 0.7853982  ;;  %vm224_vm15 = vcmp.eq.f32.partialorder %v200_v30, inf }
  0xb2   :  { %v1128_v51 = vadd.s32 4294967294, %v614_v37  ;;  %v227_v17 = vand.u32 2147483648, %v200_v30  ;;  %vm226_vm0 = vcmp.eq.f32.partialorder %v200_v30, 0.0 }
  0xb3   :  { %v633_v29 = vsel %vm548_vm13, %v632_v5, %v1647_v1 }
  0xb4   :  { %vm1129_vm6 = vcmp.lt.s32.totalorder %v1128_v51, 0  ;;  %v635_v28 = vsel %vm547_vm14, 0, %v633_v29 }
  0xb5   :  { %v617_v36 = vsel %vm1129_vm6, 0, %v1128_v51  ;;  %v1058_v16 = vadd.s32 3, %v635_v28  ;;  %v639_v18 = vand.u32 3, %v635_v28 }
  0xb6   :  { %v618_v50 = vsub.s32 32, %v617_v36  ;;  %v619_v62 = vshll.u32 %v610_v20, %v617_v36  ;;  %v622_v33 = vsub.s32 4294967266, %v617_v36 }
  0xb7   :  { %v1059_v20 = vand.u32 3, %v1058_v16  ;;  %vm644_vm1 = vcmp.eq.s32.totalorder %v639_v18, 2  ;;  %vm641_vm4 = vcmp.eq.s32.totalorder %v639_v18, 0  ;;  %vm640_vm6 = vcmp.lt.s32.totalorder %v639_v18, 2 }
  0xb8   :  { %v1195_v47 = vpop.eup %1194  ;;  %v620_v60 = vshrl.u32 %v602_v14, %v618_v50  ;;  %v623_v6 = vadd.s32 127, %v622_v33  ;;  %v1088_v14 = vld [vmem:[#allocation3 + $0x38] sm:$0xff] }
  0xb9   :  { %v1197_v53 = vpop.eup %1196  ;;  %v542_v19 = vxor.u32 2147483648, %v1195_v47  ;;  %vm1064_vm2 = vcmp.eq.s32.totalorder %v1059_v20, 2  ;;  %vm1061_vm5 = vcmp.eq.s32.totalorder %v1059_v20, 0 }
  0xba   :  { %v539_v10 = vxor.u32 2147483648, %v1197_v53  ;;  %v621_v8 = vor.u32 %v620_v60, %v619_v62  ;;  %v624_v44 = vshll.u32 %v623_v6, 23 }
  0xbb   :  { %v543_v43 = vsel %vm541_vm7, %v542_v19, %v1197_v53  ;;  %v962_v41 = vsel %vm960_vm8, %v542_v19, %v1197_v53  ;;  %vm638_vm7 = vweird.f32 %v1354_v45 }
  0xbc   :  { %v540_v26 = vsel %vm538_vm10, %v1195_v47, %v539_v10  ;;  %v625_v39 = vor.u32 4788187, %v624_v44  ;;  %v628_v56 = vcvt.s32.f32 %v621_v8  ;;  %v959_v11 = vsel %vm957_vm11, %v1195_v47, %v539_v10 }
  0xbd   :  { %v544_v57 = vsel %vm537_vm9, %v540_v26, %v543_v43  ;;  %v963_v58 = vsel %vm956_vm12, %v959_v11, %v962_v41 }
  0xbe   :  { %v545_v59 = vsel %vm535_vm3, nan, %v544_v57  ;;  %v626_v32 = vand.u32 2147483647, %v625_v39  ;;  %v964_v40 = vsel %vm535_vm3, nan, %v963_v58  ;;  %v1199_v15 = vpop.eup %1198  ;;  %vm1060_vm3 = vcmp.lt.s32.totalorder %v1059_v20, 2 }
  0xbf   :  { %v651_v2 = vmul.f32 %v545_v59, %v231_v34  ;;  %v1071_v3 = vmul.f32 %v964_v40, %v231_v34  ;;  %v223_v25 = vmul.f32 %v1199_v15, %v200_v30 }
  0xc0   :  { %v629_v4 = vmul.f32 %v628_v56, %v626_v32 }
  0xc1   :  { %v1079_v63 = vadd.f32 %v1075_v52, %v651_v2  ;;  %v1091_v24 = vadd.f32 %v1087_v31, %v1071_v3  ;;  %v225_v21 = vsel %vm224_vm15, %v200_v30, %v223_v25 }
  0xc2   :  { %v630_v42 = vxor.u32 2147483648, %v629_v4  ;;  %v228_v61 = vsel %vm226_vm0, %v227_v17, %v225_v21 }
  0xc3   :  { %1083 = vst [vmem:[#allocation6 + $0x10] sm:$0xff] %v1079_v63  ;;  %1095 = vst [vmem:[#allocation6 + $0x30] sm:$0xff] %v1091_v24  ;;  %v232_v48 = vmul.f32 0.05, %v228_v61 }
  0xc4   :  { %v631_v9 = vsel %vm548_vm13, %v630_v42, %v629_v4 }
  0xc5   :  { %v634_v12 = vsel %vm547_vm14, %v1354_v45, %v631_v9 }
  0xc6   :  { %1200 = vcosq.f32 %v634_v12 }
  0xc7   :  { %1202 = vsinq.f32 %v634_v12 }
  0xd3   :  { %v1201_v54 = vpop.eup %1200 }
  0xd4   :  { %v1203_v23 = vpop.eup %1202  ;;  %v645_v1 = vxor.u32 2147483648, %v1201_v54 }
  0xd5   :  { %v642_v27 = vxor.u32 2147483648, %v1203_v23 }
  0xd6   :  { %v646_v35 = vsel %vm644_vm1, %v645_v1, %v1203_v23  ;;  %v1066_v7 = vsel %vm1064_vm2, %v645_v1, %v1203_v23 }
  0xd7   :  { %v643_v37 = vsel %vm641_vm4, %v1201_v54, %v642_v27  ;;  %v1063_v38 = vsel %vm1061_vm5, %v1201_v54, %v642_v27 }
  0xd8   :  { %v647_v51 = vsel %vm640_vm6, %v643_v37, %v646_v35  ;;  %v1067_v55 = vsel %vm1060_vm3, %v1063_v38, %v1066_v7 }
  0xd9   :  { %v648_v49 = vsel %vm638_vm7, nan, %v647_v51  ;;  %v1068_v46 = vsel %vm638_vm7, nan, %v1067_v55 }
  0xda   :  { %v652_v0 = vmul.f32 %v648_v49, %v232_v48  ;;  %v1072_v36 = vmul.f32 %v1068_v46, %v232_v48 }
  0xdc   :  { %v1080_v50 = vadd.f32 %v1076_v22, %v652_v0  ;;  %v1092_v62 = vadd.f32 %v1088_v14, %v1072_v36 }
  0xde   :  { %1084 = vst [vmem:[#allocation6 + $0x18] sm:$0xff] %v1080_v50  ;;  %1096 = vst [vmem:[#allocation6 + $0x38] sm:$0xff] %v1092_v62 }
  0xdf   :  { %1235 = shalt.err (!%p1232_p9)
}
  0xe0   :  { %1108 = dma.vmem_to_hbm [thread:$0]  %s1103_s1, 1024, %s1699_s2, [#allocation5], %s1249_s12, %s1249_s12, %s1250_s13  }
  0xe1   :  { %1246 = dma.done.wait [#allocation5], 1024  }
  0xe2   :  { %1247 = vsyncadd [#allocation5], 4294966272 }
  0xe3   :  { %1112 = vsyncpa [#allocation4], 1 }
  0xe4   :  { %1113 = vsyncpa [#allocation5], 1 }

</bundles_post_ra>
